<compile_context>
chip_gen: v7x
topology: tpu7x:2x2x1
jax: 0.10.0
libtpu: 0.0.40
codegen_flags: <defaults>
</compile_context>

<pallas_src>
import functools

import jax
import jax.numpy as jnp
from jax.experimental import pallas as pl
from jax.experimental.pallas import tpu as pltpu


def _grad_loss_kernel(x_ref, dx_ref, dy_ref, *, penalty, w):
    """One grid step: reduce a (tbc, H*W) slab of flattened (H, W) slices.

    Finite differences on the lane-dense flattened layout:
      * W-neighbour = flat index + 1  (invalid where (p % W) == W - 1)
      * H-neighbour = flat index + W  (always valid, p < H*W - W)
    Per-lane partial sums (reduced over the slice/sublane axis only) are
    written out; the cross-lane reduction happens once in the JAX wrapper.
    """
    x = x_ref[...].astype(jnp.float32)            # (tbc, hw), accumulate in f32
    hw = x.shape[-1]

    # |d/dW| : neighbour at flat index +1.
    dxe = jnp.abs(x[:, 1:] - x[:, :-1])           # (tbc, hw - 1)
    # |d/dH| : neighbour at flat index +W (no mask needed on this layout).
    dye = jnp.abs(x[:, w:] - x[:, :-w])           # (tbc, hw - w)

    if penalty == 'l2':
        dxe = dxe * dxe
        dye = dye * dye

    # Reduce over the slice axis first (plain VPU adds), then mask the
    # W-boundary columns on the tiny per-lane row (equivalent, much cheaper
    # than masking the full block).
    dx_row = jnp.sum(dxe, axis=0, keepdims=True)  # (1, hw - 1)
    dy_row = jnp.sum(dye, axis=0, keepdims=True)  # (1, hw - w)

    p = jax.lax.broadcasted_iota(jnp.int32, (1, hw - 1), 1)
    dx_row = jnp.where((p % w) != (w - 1), dx_row, 0.0)

    dx_ref[...] = dx_row[None]                    # (1, 1, hw - 1)
    dy_ref[...] = dy_row[None]                    # (1, 1, hw - w)


def _choose_block_slices(num_slices, bytes_per_slice, target_bytes=1 << 20):
    """Largest per-step block (in slices) whose input bytes ~= target_bytes.

    ~1 MiB per block keeps (double-buffered input + f32 intermediates) well
    under the 32 MiB default scoped VMEM on v5e/v6e/v7x while already sitting
    near the measured HBM-roofline plateau.
    """
    slices = max(1, int(target_bytes) // max(1, int(bytes_per_slice)))
    if slices >= num_slices:
        return num_slices
    # Keep the sublane (second-minor) block dim a friendly multiple of 8.
    return max(8, (slices // 8) * 8)


def grad_loss(y_pred, y_true=None, penalty='l1', loss_mult=None, block_slices=None):
    """Pallas implementation of Grad.forward (y_true is unused, as in PyTorch)."""
    if y_pred.ndim != 4:
        raise ValueError(f"expected NCHW input, got shape {y_pred.shape}")
    B, C, H, W = y_pred.shape
    if H < 2 or W < 2:
        # TODO(synk): degenerate H < 2 or W < 2 gives empty diffs (NaN mean) in the
        # reference; an empty Pallas block is not expressible, so we reject it.
        raise ValueError("grad_loss requires H >= 2 and W >= 2")

    bc = B * C
    hw = H * W

    # Lane-dense streaming view; contiguous reshape (free), native dtype kept.
    x = y_pred.reshape(bc, hw)
    itemsize = jnp.dtype(y_pred.dtype).itemsize

    if block_slices is None:
        tbc = _choose_block_slices(bc, hw * itemsize)
    else:
        tbc = max(1, min(int(block_slices), bc))
        if tbc < bc:
            tbc = min(bc, max(8, (tbc // 8) * 8))

    num_blocks = -(-bc // tbc)
    padded_bc = num_blocks * tbc
    if padded_bc != bc:
        # Zero slices contribute nothing (diffs are intra-slice); means below
        # use the true element counts.
        x = jnp.pad(x, ((0, padded_bc - bc), (0, 0)))

    kernel = functools.partial(_grad_loss_kernel, penalty=penalty, w=W)

    bytes_in = padded_bc * hw * itemsize
    bytes_out = num_blocks * ((hw - 1) + (hw - W)) * 4
    cost = pl.CostEstimate(
        flops=int(6 * padded_bc * hw),
        transcendentals=0,
        bytes_accessed=int(bytes_in + bytes_out),
    )

    dx_part, dy_part = pl.pallas_call(
        kernel,
        out_shape=(
            jax.ShapeDtypeStruct((num_blocks, 1, hw - 1), jnp.float32),
            jax.ShapeDtypeStruct((num_blocks, 1, hw - W), jnp.float32),
        ),
        grid_spec=pltpu.PrefetchScalarGridSpec(
            num_scalar_prefetch=0,
            grid=(num_blocks,),
            in_specs=[pl.BlockSpec((tbc, hw), lambda i: (i, 0))],
            out_specs=[
                pl.BlockSpec((1, 1, hw - 1), lambda i: (i, 0, 0)),
                pl.BlockSpec((1, 1, hw - W), lambda i: (i, 0, 0)),
            ],
        ),
        compiler_params=pltpu.CompilerParams(
            dimension_semantics=("parallel",),
        ),
        cost_estimate=cost,
    )(x)

    # Tiny final reduction + normalization in plain JAX (matches torch.mean).
    mean_dx = jnp.sum(dx_part) / float(bc * H * (W - 1))
    mean_dy = jnp.sum(dy_part) / float(bc * (H - 1) * W)
    loss = (mean_dx + mean_dy) * 0.5
    if loss_mult is not None:
        loss = loss * loss_mult
    return loss


def _grad_loss_ref(y_pred, penalty='l1', loss_mult=None):
    """Pure-JAX reference mirroring the PyTorch forward."""
    dy = jnp.abs(y_pred[:, :, 1:, :] - y_pred[:, :, :-1, :])
    dx = jnp.abs(y_pred[:, :, :, 1:] - y_pred[:, :, :, :-1])
    if penalty == 'l2':
        dy = dy * dy
        dx = dx * dx
    d = jnp.mean(dx) + jnp.mean(dy)
    grad = d / 2.0
    if loss_mult is not None:
        grad = grad * loss_mult
    return grad


if __name__ == "__main__":
    key = jax.random.PRNGKey(0)
    k1, k2, k3 = jax.random.split(key, 3)

    # Small NCHW shape consistent with the module (Grad() defaults: l1, no mult).
    B, C, H, W = 2, 4, 16, 16
    y_pred = jax.random.normal(k1, (B, C, H, W), dtype=jnp.float32)
    y_true = jax.random.normal(k2, (B, C, H, W), dtype=jnp.float32)  # unused, as in PyTorch

    out = jax.block_until_ready(grad_loss(y_pred, y_true, penalty='l1', loss_mult=None))
    ref = _grad_loss_ref(y_pred, penalty='l1', loss_mult=None)
    assert jnp.allclose(out, ref, rtol=1e-5, atol=1e-6), (out, ref)

    # l2 / loss_mult path.
    out_l2 = jax.block_until_ready(grad_loss(y_pred, y_true, penalty='l2', loss_mult=2.0))
    ref_l2 = _grad_loss_ref(y_pred, penalty='l2', loss_mult=2.0)
    assert jnp.allclose(out_l2, ref_l2, rtol=1e-5, atol=1e-6), (out_l2, ref_l2)

    # Multi-block + padding path, non-power-of-two W, bf16 input (no wrapper upcast).
    B2, C2, H2, W2 = 3, 5, 24, 40
    y2 = jax.random.normal(k3, (B2, C2, H2, W2), dtype=jnp.float32).astype(jnp.bfloat16)
    out2 = jax.block_until_ready(
        grad_loss(y2, None, penalty='l1', loss_mult=None, block_slices=8))
    ref2 = _grad_loss_ref(y2.astype(jnp.float32), penalty='l1', loss_mult=None)
    assert jnp.allclose(out2, ref2, rtol=1e-4, atol=1e-5), (out2, ref2)

    print("KERNEL_OK")
</pallas_src>

<mosaic_0001>
module attributes {stable_mosaic.version = 11 : i64} {
  func.func @_grad_loss_kernel(%arg0: i32, %arg1: memref<8x256xf32, #tpu.memory_space<vmem>>, %arg2: memref<1x1x255xf32, #tpu.memory_space<vmem>>, %arg3: memref<1x1x240xf32, #tpu.memory_space<vmem>>) attributes {dimension_semantics = [#tpu.dimension_semantics<parallel>], iteration_bounds = array<i64: 1>, scalar_prefetch = 0 : i64, scratch_operands = 0 : i64, tpu.core_type = #tpu.core_type<tc>, window_params = [{transform_indices = @transform_0, window_bounds = array<i64: 8, 256>}, {transform_indices = @transform_1, window_bounds = array<i64: 1, 1, 255>}, {transform_indices = @transform_2, window_bounds = array<i64: 1, 1, 240>}]} {
    %c0 = arith.constant 0 : index
    %c0_0 = arith.constant 0 : index
    %0 = vector.load %arg1[%c0, %c0_0] : memref<8x256xf32, #tpu.memory_space<vmem>>, vector<8x256xf32>
    %1 = vector.extract_strided_slice %0 {offsets = [0, 1], sizes = [8, 255], strides = [1, 1]} : vector<8x256xf32> to vector<8x255xf32>
    %2 = vector.extract_strided_slice %0 {offsets = [0, 0], sizes = [8, 255], strides = [1, 1]} : vector<8x256xf32> to vector<8x255xf32>
    %3 = arith.subf %1, %2 : vector<8x255xf32>
    %4 = math.absf %3 : vector<8x255xf32>
    %5 = vector.extract_strided_slice %0 {offsets = [0, 16], sizes = [8, 240], strides = [1, 1]} : vector<8x256xf32> to vector<8x240xf32>
    %6 = vector.extract_strided_slice %0 {offsets = [0, 0], sizes = [8, 240], strides = [1, 1]} : vector<8x256xf32> to vector<8x240xf32>
    %7 = arith.subf %5, %6 : vector<8x240xf32>
    %8 = math.absf %7 : vector<8x240xf32>
    %cst = arith.constant dense<0.000000e+00> : vector<255xf32>
    %9 = vector.multi_reduction <add>, %4, %cst [0] : vector<8x255xf32> to vector<255xf32>
    %10 = vector.shape_cast %9 : vector<255xf32> to vector<1x255xf32>
    %cst_1 = arith.constant dense<0.000000e+00> : vector<240xf32>
    %11 = vector.multi_reduction <add>, %8, %cst_1 [0] : vector<8x240xf32> to vector<240xf32>
    %12 = vector.shape_cast %11 : vector<240xf32> to vector<1x240xf32>
    %13 = tpu.iota {dimensions = array<i32: 1>} : vector<1x255xi32>
    %c16_i32 = arith.constant 16 : i32
    %c0_i32 = arith.constant 0 : i32
    %14 = arith.cmpi eq, %c16_i32, %c0_i32 : i32
    %c1_i32 = arith.constant 1 : i32
    %15 = arith.select %14, %c1_i32, %c16_i32 : i32
    %16 = vector.broadcast %15 : i32 to vector<1x255xi32>
    %17 = arith.remsi %13, %16 : vector<1x255xi32>
    %c0_i32_2 = arith.constant 0 : i32
    %18 = vector.broadcast %c0_i32_2 : i32 to vector<1x255xi32>
    %19 = arith.cmpi ne, %17, %18 : vector<1x255xi32>
    %c0_i32_3 = arith.constant 0 : i32
    %20 = vector.broadcast %c0_i32_3 : i32 to vector<1x255xi32>
    %21 = arith.cmpi slt, %17, %20 : vector<1x255xi32>
    %c0_i32_4 = arith.constant 0 : i32
    %22 = arith.cmpi slt, %15, %c0_i32_4 : i32
    %23 = vector.broadcast %22 : i1 to vector<1x255xi1>
    %24 = vector.broadcast %23 : vector<1x255xi1> to vector<1x255xi1>
    %25 = arith.xori %21, %24 : vector<1x255xi1>
    %26 = arith.andi %25, %19 : vector<1x255xi1>
    %27 = vector.broadcast %15 : i32 to vector<1x255xi32>
    %28 = arith.addi %17, %27 : vector<1x255xi32>
    %29 = arith.select %26, %28, %17 : vector<1x255xi1>, vector<1x255xi32>
    %c15_i32 = arith.constant 15 : i32
    %30 = vector.broadcast %c15_i32 : i32 to vector<1x255xi32>
    %31 = arith.cmpi ne, %29, %30 : vector<1x255xi32>
    %cst_5 = arith.constant 0.000000e+00 : f32
    %32 = vector.broadcast %cst_5 : f32 to vector<1x255xf32>
    %33 = arith.select %31, %10, %32 : vector<1x255xi1>, vector<1x255xf32>
    %34 = vector.shape_cast %33 : vector<1x255xf32> to vector<1x1x255xf32>
    %c0_6 = arith.constant 0 : index
    %c0_7 = arith.constant 0 : index
    %c0_8 = arith.constant 0 : index
    %35 = vector.load %arg2[%c0_6, %c0_7, %c0_8] : memref<1x1x255xf32, #tpu.memory_space<vmem>>, vector<1x1x255xf32>
    tpu.vector_store %arg2[%c0_6, %c0_7, %c0_8], %34 {strides = array<i32>} : memref<1x1x255xf32, #tpu.memory_space<vmem>>, vector<1x1x255xf32>,
    %36 = vector.shape_cast %12 : vector<1x240xf32> to vector<1x1x240xf32>
    %c0_9 = arith.constant 0 : index
    %c0_10 = arith.constant 0 : index
    %c0_11 = arith.constant 0 : index
    %37 = vector.load %arg3[%c0_9, %c0_10, %c0_11] : memref<1x1x240xf32, #tpu.memory_space<vmem>>, vector<1x1x240xf32>
    tpu.vector_store %arg3[%c0_9, %c0_10, %c0_11], %36 {strides = array<i32>} : memref<1x1x240xf32, #tpu.memory_space<vmem>>, vector<1x1x240xf32>,
    return
  }
  func.func @transform_0(%arg0: i32) -> (i32, i32) {
    %c0_i32 = arith.constant 0 : i32
    %c0_i32_0 = arith.constant 0 : i32
    return %arg0, %c0_i32 : i32, i32
  }
  func.func @transform_1(%arg0: i32) -> (i32, i32, i32) {
    %c0_i32 = arith.constant 0 : i32
    %c0_i32_0 = arith.constant 0 : i32
    %c0_i32_1 = arith.constant 0 : i32
    return %arg0, %c0_i32, %c0_i32_0 : i32, i32, i32
  }
  func.func @transform_2(%arg0: i32) -> (i32, i32, i32) {
    %c0_i32 = arith.constant 0 : i32
    %c0_i32_0 = arith.constant 0 : i32
    %c0_i32_1 = arith.constant 0 : i32
    return %arg0, %c0_i32, %c0_i32_0 : i32, i32, i32
  }
}

</mosaic_0001>

<bundles_post_ra>
// kernel: tpu_custom_call.1
= control target key start
LH: loop header
LB: loop body
LE: loop exit
PB: predicated region body
PF: predicated region fallthrough
CT: control target
= control target key end

     0   :  { %8 = vsyncpa [#allocation3], 0  ;;  %s351_s0 = inlined_call_operand.hbm [shape: f32[8,256], index: 0, kind: input, shape index: {}]   ;;  %s352_s1 = inlined_call_operand.hbm [shape: f32[1,1,255], index: 1, kind: output, shape index: {0}]   ;;  %s353_s2 = inlined_call_operand.hbm [shape: f32[1,1,240], index: 2, kind: output, shape index: {1}]  }
   0x1   :  { %9 = vsyncpa [#allocation4], 0 }
   0x2   :  { %10 = vsyncpa [#allocation7], 0  ;;  %s279_s9 = smov [#allocation2]   ;;  %s207_s13 = scalar_lea.hbm %s351_s0, 256 }
   0x3   :  { %s17_s10 = sshll.u32 %s279_s9, 4  ;;  %p208_p0 = scmp.ne.s32.totalorder %s351_s0, %s207_s13  ;;  %s18_s10 = int_to_ptr.vmem [resolvable:$true] %s17_s10 }
   0x4   :  { %p211_p1 = scmp.lt.u32.totalorder %s207_s13, %s351_s0 }
   0x6   :  { %p213_p2 = pnand %p211_p1, %p208_p0 }
   0x8   :  { %216 = shalt.err (!%p213_p2)
}
   0x9   :  { %s217_s18 = scalar_lea.vmem %s18_s10, 256  ;;  %p222_p4 = scmp.lt.s32.totalorder %s18_s10, %s18_s10 }
   0xa   :  { %p218_p3 = scmp.ne.s32.totalorder %s18_s10, %s217_s18  ;;  %p223_p5 = scmp.lt.s32.totalorder %s217_s18, %s217_s18 }
   0xc   :  { %p224_p6 = por %p223_p5, %p222_p4 }
   0xe   :  { %p225_p7 = pnand %p224_p6, %p218_p3 }
  0x10   :  { %228 = shalt.err (!%p225_p7)
}
  0x11   :  { %20 = dma.hbm_to_vmem [thread:$0]  %s351_s0, 256, %s18_s10, [#allocation3]  }
  0x12   :  { %273 = dma.done.wait [#allocation3], 256  }
  0x13   :  { %274 = vsyncadd [#allocation3], 4294967040  ;;  %v24_v0 = vld [vmem:[#allocation2] sm:$0xff]  ;;  %s280_s21 = smov 1   ;;  %s281_s22 = smov 16   ;;  %v25_v1 = vld [vmem:[#allocation2 + $0x8] sm:$0xff]  ;;  %v80_v26 = vlaneseq }
  0x14   :  { %28 = vrot.lane.b32.xlu1 %v24_v0, %s280_s21  ;;  %40 = vrot.lane.b32.xlu0 %v24_v0, %s281_s22  ;;  %vm52_vm0 = vcmask 1047560   ;;  %vm66_vm1 = vcmask 1047680   ;;  %vm32_vm2 = vcmask 7168   ;;  %vm44_vm3 = vcmask 130048   ;;  %s283_s0 = smov 127   ;;  %s284_s23 = smov 112  }
  0x15   :  { %v282_v27 = vmov 1966171168   ;;  %v128_v37 = vshrl.u32 %v80_v26, 7  ;;  %v81_v51 = vand.u32 127, %v80_v26  ;;  %vm115_vm5 = vcmask 1039360   ;;  %s285_s24 = smov [#allocation5]  }
  0x16   :  { %v125_v28 = vunpack.c.l.s4 %v282_v27  ;;  %s176_s25 = sshll.u32 %s285_s24, 4  ;;  %s286_s26 = smov [#allocation6]   ;;  %vm164_vm7 = vcmask 916480   ;;  %vm141_vm8 = vcmp.lt.s32.totalorder %v80_v26, 255  ;;  %vm314_vm9 = vcmp.lt.s32.totalorder %v80_v26, 240  ;;  %s177_s25 = int_to_ptr.vmem [resolvable:$true] %s176_s25 }
  0x17   :  { %v82_v52 = vadd.s32 128, %v81_v51  ;;  %v87_v54 = vand.u32 15, %v81_v51  ;;  %s186_s27 = sshll.u32 %s286_s26, 4  ;;  %s229_s28 = scalar_lea.vmem %s177_s25, 32  ;;  %s318_s27 = int_to_ptr.vmem [resolvable:$true] %s186_s27 }
  0x18   :  { %30 = vrot.lane.b32.xlu1 %v25_v1, %s280_s21  ;;  %42 = vrot.lane.b32.xlu0 %v25_v1, %s281_s22  ;;  %v126_v36 = vunpack.c.0.s8 %v125_v28  ;;  %p230_p8 = scmp.ne.s32.totalorder %s177_s25, %s229_s28  ;;  %p234_p9 = scmp.lt.s32.totalorder %s177_s25, %s177_s25 }
  0x19   :  { %v94_v53 = vand.u32 15, %v82_v52  ;;  %vm107_vm6 = vcmp.ne.s32.totalorder %v87_v54, 15  ;;  %p235_p10 = scmp.lt.s32.totalorder %s229_s28, %s229_s28 }
  0x1a   :  { %v129_v47 = vsub.s32 %v126_v36, %v128_v37 }
  0x1b   :  { %vm108_vm4 = vcmp.ne.s32.totalorder %v94_v53, 15  ;;  %p236_p11 = por %p235_p10, %p234_p9 }
  0x1d   :  { %p237_p12 = pnand %p236_p11, %p230_p8 }
  0x86   :  { %v29_v2 = vpop.permute.xlu1 %28  ;;  %v41_v3 = vpop.permute.xlu0 %40 }
  0x87   :  { %v36_v4 = vsub.f32 %v24_v0, %v29_v2  ;;  %v48_v5 = vsub.f32 %v24_v0, %v41_v3 }
  0x89   :  { %v38_v6 = vand.u32 2147483647, %v36_v4  ;;  %v50_v7 = vand.u32 2147483647, %v48_v5 }
  0x8a   :  { %v31_v8 = vpop.permute.xlu1 %30  ;;  %v43_v9 = vpop.permute.xlu0 %42 }
  0x8b   :  { %v53_v10 = vsel %vm52_vm0, %v38_v6, 0.0  ;;  %v67_v11 = vsel %vm66_vm1, %v50_v7, 0.0  ;;  %v33_v12 = vsel %vm32_vm2, %v29_v2, %v31_v8  ;;  %v45_v13 = vsel %vm44_vm3, %v41_v3, %v43_v9 }
  0x8c   :  { %v54_v14 = vrot.slane %v53_v10, 4  ;;  %v68_v15 = vrot.slane %v67_v11, 4  ;;  %v37_v16 = vsub.f32 %v25_v1, %v33_v12  ;;  %v49_v17 = vsub.f32 %v25_v1, %v45_v13 }
  0x8e   :  { %v55_v18 = vadd.f32 %v54_v14, %v53_v10  ;;  %v69_v19 = vadd.f32 %v68_v15, %v67_v11  ;;  %v39_v20 = vand.u32 2147483647, %v37_v16  ;;  %v51_v21 = vand.u32 2147483647, %v49_v17 }
  0x90   :  { %v56_v22 = vrot.slane %v55_v18, 2  ;;  %v70_v23 = vrot.slane %v69_v19, 2  ;;  %v60_v24 = vrot.slane %v39_v20, 4  ;;  %v74_v25 = vrot.slane %v51_v21, 4 }
  0x92   :  { %v71_v29 = vadd.f32 %v70_v23, %v69_v19  ;;  %v61_v30 = vadd.f32 %v60_v24, %v39_v20  ;;  %v75_v31 = vadd.f32 %v74_v25, %v51_v21  ;;  %v57_v32 = vadd.f32 %v56_v22, %v55_v18 }
  0x94   :  { %v62_v33 = vrot.slane %v61_v30, 2  ;;  %v76_v34 = vrot.slane %v75_v31, 2  ;;  %v58_v35 = vrot.slane %v57_v32, 1  ;;  %v72_v38 = vrot.slane %v71_v29, 1 }
  0x96   :  { %v77_v39 = vadd.f32 %v76_v34, %v75_v31  ;;  %v59_v40 = vadd.f32 %v58_v35, %v57_v32  ;;  %v63_v41 = vadd.f32 %v62_v33, %v61_v30  ;;  %v73_v44 = vadd.f32 %v72_v38, %v71_v29 }
  0x98   :  { %v78_v42 = vrot.slane %v77_v39, 1  ;;  %111 = vrot.lane.b32.xlu0 %v59_v40, %s283_s0  ;;  %v64_v43 = vrot.slane %v63_v41, 1 }
  0x9a   :  { %v79_v45 = vadd.f32 %v78_v42, %v77_v39  ;;  %v65_v46 = vadd.f32 %v64_v43, %v63_v41 }
  0x9c   :  { %113 = vrot.lane.b32.xlu1 %v65_v46, %s283_s0  ;;  %v146_v48 = vcombine.low %v73_v44, %v79_v45 }
  0x9e   :  { %v153_v49 = vrot.slane %v146_v48, %v129_v47 }
  0xa0   :  { %v160_v50 = vrot.slane %v153_v49, %v129_v47 }
  0xa2   :  { %161 = vrot.lane.b32.xlu0 %v160_v50, %s284_s23 }
 0x10a   :  { %v112_v55 = vpop.permute.xlu0 %111 }
 0x10e   :  { %v114_v56 = vpop.permute.xlu1 %113 }
 0x10f   :  { %v116_v57 = vsel %vm115_vm5, %v112_v55, %v114_v56  ;;  %v120_v58 = vsel %vm108_vm4, %v114_v56, 0.0 }
 0x110   :  { %v119_v59 = vsel %vm107_vm6, %v116_v57, 0.0 }
 0x111   :  { %v123_v60 = vcombine.low %v119_v59, %v120_v58 }
 0x113   :  { %v130_v61 = vrot.slane %v123_v60, %v129_v47 }
 0x114   :  { %v162_v62 = vpop.permute.xlu0 %161 }
 0x115   :  { %v137_v63 = vrot.slane %v130_v61, %v129_v47  ;;  %v163_v0 = vrot.slane %v162_v62, 1 }
 0x117   :  { %v165_v2 = vsel %vm164_vm7, %v162_v62, %v163_v0  ;;  %143 = vst.msk [vmem:[#allocation5] sm:$0x3] %vm141_vm8, %v137_v63 }
 0x118   :  { %240 = shalt.err (!%p237_p12)
}
 0x119   :  { %s241_s3 = scalar_lea.hbm %s352_s1, 32 }
 0x11a   :  { %p242_p13 = scmp.ne.s32.totalorder %s352_s1, %s241_s3  ;;  %p245_p0 = scmp.lt.u32.totalorder %s241_s3, %s352_s1 }
 0x11c   :  { %p247_p1 = pnand %p245_p0, %p242_p13 }
 0x11e   :  { %250 = shalt.err (!%p247_p1)
}
 0x11f   :  { %179 = dma.vmem_to_hbm [thread:$0]  %s177_s25, 32, %s352_s1, [#allocation4]   ;;  %169 = vst.msk [vmem:[#allocation6] sm:$0x3] %vm314_vm9, %v165_v2 }
 0x120   :  { %s251_s10 = scalar_lea.vmem %s318_s27, 32  ;;  %p256_p3 = scmp.lt.s32.totalorder %s318_s27, %s318_s27 }
 0x121   :  { %p252_p2 = scmp.ne.s32.totalorder %s318_s27, %s251_s10  ;;  %p257_p4 = scmp.lt.s32.totalorder %s251_s10, %s251_s10 }
 0x123   :  { %p258_p5 = por %p257_p4, %p256_p3 }
 0x125   :  { %p259_p6 = pnand %p258_p5, %p252_p2 }
 0x127   :  { %262 = shalt.err (!%p259_p6)
}
 0x128   :  { %s263_s13 = scalar_lea.hbm %s353_s2, 32 }
 0x129   :  { %p264_p7 = scmp.ne.s32.totalorder %s353_s2, %s263_s13  ;;  %p267_p8 = scmp.lt.u32.totalorder %s263_s13, %s353_s2 }
 0x12b   :  { %p269_p9 = pnand %p267_p8, %p264_p7 }
 0x12d   :  { %272 = shalt.err (!%p269_p9)
}
 0x12e   :  { %189 = dma.vmem_to_hbm [thread:$0]  %s318_s27, 32, %s353_s2, [#allocation7]  }
 0x12f   :  { %275 = dma.done.wait [#allocation4], 32  }
 0x130   :  { %276 = vsyncadd [#allocation4], 4294967264 }
 0x131   :  { %277 = dma.done.wait [#allocation7], 32  }
 0x132   :  { %278 = vsyncadd [#allocation7], 4294967264 }
 0x133   :  { %196 = vsyncpa [#allocation3], 1 }
 0x134   :  { %197 = vsyncpa [#allocation4], 1 }
 0x135   :  { %198 = vsyncpa [#allocation7], 1 }

</bundles_post_ra>
